<compile_context>
chip_gen: v6e
topology: v6e:2x2x1
jax: 0.10.0
libtpu: 0.0.40
codegen_flags: <defaults>
</compile_context>

<pallas_src>
import functools

import jax
import jax.numpy as jnp
from jax.experimental import pallas as pl
from jax.experimental.pallas import tpu as pltpu

HIDDEN_PAD = 128    # 100 -> 128 (zero-padded; relu(0 + 0) == 0 so it is inert)
OUT_PAD = 128       # 10  -> 128 (lane-dense output block)
NEG_MASK = -1e30    # bias of padded logit columns -> exp underflows to exactly 0


def netv2_kernel(x_ref, w1_ref, b1_ref, w2_ref, b2_ref, o_ref, *, approx_recip):
    # Cast the streamed x tile in-register (no wrapper-side astype materialization).
    x = x_ref[...]
    if x.dtype != w1_ref.dtype:
        x = x.astype(w1_ref.dtype)
    # fc1 + ReLU: compute-dtype inputs, f32 accumulation on the MXU.
    h = jnp.dot(x, w1_ref[...], preferred_element_type=jnp.float32)
    h = jnp.maximum(h + b1_ref[...], 0.0)                 # b1 is (1, 128) f32, broadcasts
    # fc2: run in the compute dtype (bf16 on the perf path -> full MXU rate on v5e),
    # still accumulating in f32.
    logits = jnp.dot(h.astype(w2_ref.dtype), w2_ref[...],
                     preferred_element_type=jnp.float32)
    logits = logits + b2_ref[...]                         # padded columns carry -1e30 bias
    # Numerically-stable softmax over the lane-dense (TB, 128) logits.
    m = jnp.max(logits, axis=-1, keepdims=True)
    e = jnp.exp(logits - m)                               # padded columns -> exactly 0
    denom = jnp.sum(e, axis=-1, keepdims=True)
    o_ref[...] = (e * pl.reciprocal(denom, approx=approx_recip)).astype(o_ref.dtype)


def _round_up(n, m):
    return ((n + m - 1) // m) * m


def netv2_forward(x, w1, b1, w2, b2, *, block_b=2048,
                  compute_dtype=jnp.bfloat16, out_dtype=None, approx_recip=False):
    """y = softmax(relu(x @ w1 + b1) @ w2 + b2, axis=1).

    x: [B, 784] (f32 or bf16 -- streamed as-is, cast in-kernel);
    w1: [784, 100]; b1: [100]; w2: [100, 10]; b2: [10]
    (weights in [in, out] math layout, i.e. transposed vs torch nn.Linear.weight).
    """
    B, in_dim = x.shape
    hid = w1.shape[1]
    out = w2.shape[1]
    if out_dtype is None:
        out_dtype = compute_dtype

    # --- pad parameters once into lane-dense, VMEM-resident layouts ----------
    w1p = jnp.zeros((in_dim, HIDDEN_PAD), jnp.float32).at[:, :hid].set(w1)
    w1p = w1p.astype(compute_dtype)
    b1p = jnp.zeros((1, HIDDEN_PAD), jnp.float32).at[:, :hid].set(b1.reshape(1, -1))
    w2p = jnp.zeros((HIDDEN_PAD, OUT_PAD), jnp.float32).at[:hid, :out].set(w2)
    w2p = w2p.astype(compute_dtype)
    b2p = jnp.full((1, OUT_PAD), NEG_MASK, jnp.float32).at[:, :out].set(b2.reshape(1, -1))

    # --- batch tiling: no padding of x; pl.cdiv grid + Pallas-masked last tile
    if B <= 8:
        tb = B                                   # single tile equal to the full batch dim
    else:
        # >= 2 grid steps so the "parallel" batch axis can shard across v7x's two
        # TensorCores; capped at block_b (2048 keeps VMEM ~15 MiB with f32 streaming,
        # under the 32 MiB limit set below and far from any physical ceiling).
        tb = max(8, min(block_b, _round_up(pl.cdiv(B, 2), 8)))
    grid = (pl.cdiv(B, tb),)

    out_padded = pl.pallas_call(
        functools.partial(netv2_kernel, approx_recip=approx_recip),
        out_shape=jax.ShapeDtypeStruct((B, OUT_PAD), out_dtype),
        grid=grid,
        in_specs=[
            pl.BlockSpec((tb, in_dim), lambda i: (i, 0)),           # streamed batch tile
            pl.BlockSpec((in_dim, HIDDEN_PAD), lambda i: (0, 0)),   # VMEM-resident weights
            pl.BlockSpec((1, HIDDEN_PAD), lambda i: (0, 0)),
            pl.BlockSpec((HIDDEN_PAD, OUT_PAD), lambda i: (0, 0)),
            pl.BlockSpec((1, OUT_PAD), lambda i: (0, 0)),
        ],
        out_specs=pl.BlockSpec((tb, OUT_PAD), lambda i: (i, 0)),    # lane-dense 128-wide store
        compiler_params=pltpu.CompilerParams(
            dimension_semantics=("parallel",),         # megacore: shard batch tiles over TCs
            vmem_limit_bytes=32 * 1024 * 1024,         # TB=2048 f32-streamed ~15 MiB exceeds
                                                       # v5e's 16 MiB default scoped limit
        ),
    )(x, w1p, b1p, w2p, b2p)

    # Only the cheap column slice remains in the wrapper; consumers that tolerate the
    # padded (B, 128) layout can take out_padded directly.
    return out_padded[:, :out]


def init_params(key):
    """Deterministic init mimicking PyTorch nn.Linear (uniform +/- 1/sqrt(fan_in)),
    stored in math layout: W [in, out], b [out]."""
    k1, k2, k3, k4 = jax.random.split(key, 4)
    in1, out1 = 784, 100
    in2, out2 = 100, 10
    lim1 = 1.0 / jnp.sqrt(float(in1))
    lim2 = 1.0 / jnp.sqrt(float(in2))
    w1 = jax.random.uniform(k1, (in1, out1), jnp.float32, -lim1, lim1)
    b1 = jax.random.uniform(k2, (out1,), jnp.float32, -lim1, lim1)
    w2 = jax.random.uniform(k3, (in2, out2), jnp.float32, -lim2, lim2)
    b2 = jax.random.uniform(k4, (out2,), jnp.float32, -lim2, lim2)
    return w1, b1, w2, b2


if __name__ == "__main__":
    key = jax.random.PRNGKey(0)
    kx, kp = jax.random.split(key)
    w1, b1, w2, b2 = init_params(kp)

    def ref_fwd(xx):
        h = jnp.maximum(xx @ w1 + b1, 0.0)
        return jax.nn.softmax(h @ w2 + b2, axis=1)

    # 1) f32 compute / f32 output path: tight validation, single full tile.
    B = 8
    x = jax.random.normal(kx, (B, 784), dtype=jnp.float32)
    y_ref = ref_fwd(x)
    y32 = jax.block_until_ready(
        netv2_forward(x, w1, b1, w2, b2, compute_dtype=jnp.float32))
    assert y32.shape == (B, 10) and y32.dtype == jnp.float32
    assert jnp.allclose(y32, y_ref, atol=1e-4, rtol=0.0)
    assert jnp.allclose(jnp.sum(y32, axis=1), 1.0, atol=1e-4)

    # 2) default perf path (bf16 compute + bf16 output), ragged batch of 10 rows
    #    split over two 8-row tiles to exercise the pl.cdiv-masked last tile.
    B2 = 10
    x2 = jax.random.normal(kx, (B2, 784), dtype=jnp.float32)
    y2_ref = ref_fwd(x2)
    y2 = jax.block_until_ready(netv2_forward(x2, w1, b1, w2, b2))
    assert y2.shape == (B2, 10) and y2.dtype == jnp.bfloat16
    y2f = y2.astype(jnp.float32)
    assert jnp.allclose(y2f, y2_ref, atol=2e-2, rtol=0.0)
    assert jnp.allclose(jnp.sum(y2f, axis=1), 1.0, atol=1e-2)

    print("KERNEL_OK")
</pallas_src>

<mosaic_0001>
module attributes {stable_mosaic.version = 11 : i64} {
  func.func @netv2_kernel(%arg0: i32, %arg1: memref<8x784xf32, #tpu.memory_space<vmem>>, %arg2: memref<784x128xf32, #tpu.memory_space<vmem>>, %arg3: memref<1x128xf32, #tpu.memory_space<vmem>>, %arg4: memref<128x128xf32, #tpu.memory_space<vmem>>, %arg5: memref<1x128xf32, #tpu.memory_space<vmem>>, %arg6: memref<8x128xf32, #tpu.memory_space<vmem>>) attributes {dimension_semantics = [#tpu.dimension_semantics<parallel>], iteration_bounds = array<i64: 1>, scalar_prefetch = 0 : i64, scratch_operands = 0 : i64, tpu.core_type = #tpu.core_type<tc>, window_params = [{transform_indices = @transform_0, window_bounds = array<i64: 8, 784>}, {pipeline_mode = #tpu.pipeline_mode<synchronous>, transform_indices = @transform_1, window_bounds = array<i64: 784, 128>}, {pipeline_mode = #tpu.pipeline_mode<synchronous>, transform_indices = @transform_2, window_bounds = array<i64: 1, 128>}, {pipeline_mode = #tpu.pipeline_mode<synchronous>, transform_indices = @transform_3, window_bounds = array<i64: 128, 128>}, {pipeline_mode = #tpu.pipeline_mode<synchronous>, transform_indices = @transform_4, window_bounds = array<i64: 1, 128>}, {transform_indices = @transform_5, window_bounds = array<i64: 8, 128>}]} {
    %c0 = arith.constant 0 : index
    %c0_0 = arith.constant 0 : index
    %0 = vector.load %arg1[%c0, %c0_0] : memref<8x784xf32, #tpu.memory_space<vmem>>, vector<8x784xf32>
    %c0_1 = arith.constant 0 : index
    %c0_2 = arith.constant 0 : index
    %1 = vector.load %arg2[%c0_1, %c0_2] : memref<784x128xf32, #tpu.memory_space<vmem>>, vector<784x128xf32>
    %cst = arith.constant dense<0.000000e+00> : vector<8x128xf32>
    %2 = tpu.matmul %0, %1, %cst {dimension_numbers = #tpu.dot_dimension_numbers<[1], [0], [0], [1], [0, 0, 1, 1], [], []>} : vector<8x784xf32>, vector<784x128xf32>, vector<8x128xf32> -> vector<8x128xf32>
    %c0_3 = arith.constant 0 : index
    %c0_4 = arith.constant 0 : index
    %3 = vector.load %arg3[%c0_3, %c0_4] : memref<1x128xf32, #tpu.memory_space<vmem>>, vector<1x128xf32>
    %4 = vector.broadcast %3 : vector<1x128xf32> to vector<8x128xf32>
    %5 = arith.addf %2, %4 : vector<8x128xf32>
    %cst_5 = arith.constant 0.000000e+00 : f32
    %6 = vector.broadcast %cst_5 : f32 to vector<8x128xf32>
    %7 = arith.maximumf %5, %6 : vector<8x128xf32>
    %c0_6 = arith.constant 0 : index
    %c0_7 = arith.constant 0 : index
    %8 = vector.load %arg4[%c0_6, %c0_7] : memref<128x128xf32, #tpu.memory_space<vmem>>, vector<128x128xf32>
    %cst_8 = arith.constant dense<0.000000e+00> : vector<8x128xf32>
    %9 = tpu.matmul %7, %8, %cst_8 {dimension_numbers = #tpu.dot_dimension_numbers<[1], [0], [0], [1], [0, 0, 1, 1], [], []>} : vector<8x128xf32>, vector<128x128xf32>, vector<8x128xf32> -> vector<8x128xf32>
    %c0_9 = arith.constant 0 : index
    %c0_10 = arith.constant 0 : index
    %10 = vector.load %arg5[%c0_9, %c0_10] : memref<1x128xf32, #tpu.memory_space<vmem>>, vector<1x128xf32>
    %11 = vector.broadcast %10 : vector<1x128xf32> to vector<8x128xf32>
    %12 = arith.addf %9, %11 : vector<8x128xf32>
    %cst_11 = arith.constant dense<0xFF800000> : vector<8xf32>
    %13 = vector.multi_reduction <maximumf>, %12, %cst_11 [1] : vector<8x128xf32> to vector<8xf32>
    %14 = vector.shape_cast %13 : vector<8xf32> to vector<8x1xf32>
    %15 = vector.broadcast %14 : vector<8x1xf32> to vector<8x128xf32>
    %16 = arith.subf %12, %15 : vector<8x128xf32>
    %17 = math.exp %16 : vector<8x128xf32>
    %cst_12 = arith.constant dense<0.000000e+00> : vector<8xf32>
    %18 = vector.multi_reduction <add>, %17, %cst_12 [1] : vector<8x128xf32> to vector<8xf32>
    %19 = vector.shape_cast %18 : vector<8xf32> to vector<8x1xf32>
    %20 = tpu.reciprocal %19 : vector<8x1xf32> -> vector<8x1xf32>
    %21 = vector.broadcast %20 : vector<8x1xf32> to vector<8x128xf32>
    %22 = arith.mulf %17, %21 : vector<8x128xf32>
    %c0_13 = arith.constant 0 : index
    %c0_14 = arith.constant 0 : index
    %23 = vector.load %arg6[%c0_13, %c0_14] : memref<8x128xf32, #tpu.memory_space<vmem>>, vector<8x128xf32>
    tpu.vector_store %arg6[%c0_13, %c0_14], %22 {strides = array<i32>} : memref<8x128xf32, #tpu.memory_space<vmem>>, vector<8x128xf32>,
    return
  }
  func.func @transform_0(%arg0: i32) -> (i32, i32) {
    %c0_i32 = arith.constant 0 : i32
    %c0_i32_0 = arith.constant 0 : i32
    return %arg0, %c0_i32 : i32, i32
  }
  func.func @transform_1(%arg0: i32) -> (i32, i32) {
    %c0_i32 = arith.constant 0 : i32
    %c0_i32_0 = arith.constant 0 : i32
    %c0_i32_1 = arith.constant 0 : i32
    return %c0_i32, %c0_i32_0 : i32, i32
  }
  func.func @transform_2(%arg0: i32) -> (i32, i32) {
    %c0_i32 = arith.constant 0 : i32
    %c0_i32_0 = arith.constant 0 : i32
    %c0_i32_1 = arith.constant 0 : i32
    return %c0_i32, %c0_i32_0 : i32, i32
  }
  func.func @transform_3(%arg0: i32) -> (i32, i32) {
    %c0_i32 = arith.constant 0 : i32
    %c0_i32_0 = arith.constant 0 : i32
    %c0_i32_1 = arith.constant 0 : i32
    return %c0_i32, %c0_i32_0 : i32, i32
  }
  func.func @transform_4(%arg0: i32) -> (i32, i32) {
    %c0_i32 = arith.constant 0 : i32
    %c0_i32_0 = arith.constant 0 : i32
    %c0_i32_1 = arith.constant 0 : i32
    return %c0_i32, %c0_i32_0 : i32, i32
  }
  func.func @transform_5(%arg0: i32) -> (i32, i32) {
    %c0_i32 = arith.constant 0 : i32
    %c0_i32_0 = arith.constant 0 : i32
    return %arg0, %c0_i32 : i32, i32
  }
}

</mosaic_0001>

<bundles_post_ra>
// kernel: tpu_custom_call.1
= control target key start
LH: loop header
LB: loop body
LE: loop exit
PB: predicated region body
PF: predicated region fallthrough
CT: control target
= control target key end

     0   :  { %10 = vsyncpa [#allocation3], 0  ;;  %s920_s0 = inlined_call_operand.hbm [shape: f32[8,784], index: 0, kind: input, shape index: {}]   ;;  %s921_s1 = inlined_call_operand.hbm [shape: f32[784,128], index: 1, kind: input, shape index: {}]   ;;  %s922_s2 = inlined_call_operand.vmem [shape: f32[1,128], index: 2, kind: input, shape index: {}]   ;;  %s923_s3 = inlined_call_operand.hbm [shape: f32[128,128], index: 3, kind: input, shape index: {}]   ;;  %s924_s4 = inlined_call_operand.vmem [shape: f32[1,128], index: 4, kind: input, shape index: {}]   ;;  %s925_s5 = inlined_call_operand.hbm [shape: f32[8,128], index: 5, kind: output, shape index: {}]  }
   0x1   :  { %11 = vsyncpa [#allocation6], 0 }
   0x2   :  { %12 = vsyncpa [#allocation4], 0  ;;  %s844_s18 = smov [#allocation5]  }
   0x3   :  { %s28_s19 = sshll.u32 %s844_s18, 4  ;;  %s29_s19 = int_to_ptr.vmem [resolvable:$true] %s28_s19 }
   0x4   :  { %s766_s20 = scalar_lea.vmem %s29_s19, 12544  ;;  %p771_p1 = scmp.lt.s32.totalorder %s29_s19, %s29_s19 }
   0x5   :  { %p767_p0 = scmp.ne.s32.totalorder %s29_s19, %s766_s20  ;;  %p772_p2 = scmp.lt.s32.totalorder %s766_s20, %s766_s20 }
   0x7   :  { %p773_p3 = por %p772_p2, %p771_p1 }
   0x9   :  { %p774_p4 = pnand %p773_p3, %p767_p0 }
   0xb   :  { %777 = shalt.err (!%p774_p4)
}
   0xc   :  { %s845_s21 = smov 128   ;;  %s846_s22 = smov 8  }
   0xd   :  { %34 = dma.hbm_to_vmem [thread:$0]  %s921_s1, 12544, %s29_s19, [#allocation6], %s845_s21, %s845_s21, %s846_s22  }
   0xe   :  { %s847_s25 = smov [#allocation2]   ;;  %s848_s27 = smov [#allocation7]  }
   0xf   :  { %s19_s26 = sshll.u32 %s847_s25, 4  ;;  %s42_s28 = sshll.u32 %s848_s27, 4  ;;  %s20_s26 = int_to_ptr.vmem [resolvable:$true] %s19_s26  ;;  %s43_s28 = int_to_ptr.vmem [resolvable:$true] %s42_s28 }
  0x10   :  { %s786_s29 = scalar_lea.vmem %s20_s26, 896  ;;  %p791_p6 = scmp.lt.s32.totalorder %s20_s26, %s20_s26 }
  0x11   :  { %p787_p5 = scmp.ne.s32.totalorder %s20_s26, %s786_s29  ;;  %p792_p7 = scmp.lt.s32.totalorder %s786_s29, %s786_s29 }
  0x13   :  { %p793_p8 = por %p792_p7, %p791_p6 }
  0x15   :  { %p794_p9 = pnand %p793_p8, %p787_p5 }
  0x17   :  { %797 = shalt.err (!%p794_p9)
}
  0x18   :  { %22 = dma.hbm_to_vmem [thread:$0]  %s920_s0, 896, %s20_s26, [#allocation3]  }
  0x19   :  { %s806_s7 = scalar_lea.vmem %s43_s28, 2048  ;;  %p811_p11 = scmp.lt.s32.totalorder %s43_s28, %s43_s28 }
  0x1a   :  { %p807_p10 = scmp.ne.s32.totalorder %s43_s28, %s806_s7  ;;  %p812_p12 = scmp.lt.s32.totalorder %s806_s7, %s806_s7 }
  0x1c   :  { %p813_p13 = por %p812_p12, %p811_p11 }
  0x1e   :  { %p814_p0 = pnand %p813_p13, %p807_p10 }
  0x20   :  { %817 = shalt.err (!%p814_p0)
}
  0x21   :  { %48 = dma.hbm_to_vmem [thread:$0]  %s923_s3, 2048, %s43_s28, [#allocation6], %s845_s21, %s845_s21, %s846_s22  }
  0x22   :  { %838 = dma.done.wait [#allocation3], 896  }
  0x23   :  { %839 = vsyncadd [#allocation3], 4294966400 }
  0x24   :  { %840 = dma.done.wait [#allocation6], 14592  }
  0x25   :  { %841 = vsyncadd [#allocation6], 4294952704  ;;  %v98_v0 = vld [vmem:[#allocation5 + $0xf8] sm:$0xff]  ;;  %v97_v2 = vld [vmem:[#allocation5 + $0xf0] sm:$0xff]  ;;  %vm172_vm0 = vcmask 130048   ;;  %vm850_vm1 = vmmov 0  }
  0x26   :  { %v82_v1 = vld [vmem:[#allocation5 + $0x78] sm:$0xff]  ;;  %579 = vmatprep.subr.mxu0 %v98_v0  ;;  %v81_v4 = vld [vmem:[#allocation5 + $0x70] sm:$0xff]  ;;  %v96_v6 = vld [vmem:[#allocation5 + $0xe8] sm:$0xff] }
  0x27   :  { %v130_v3 = vld [vmem:[#allocation5 + $0x1f8] sm:$0xff]  ;;  %580 = vmatpush3.msra.mxu0 %v82_v1  ;;  %v129_v7 = vld [vmem:[#allocation5 + $0x1f0] sm:$0xff]  ;;  %v80_v8 = vld [vmem:[#allocation5 + $0x68] sm:$0xff] }
  0x28   :  { %v114_v5 = vld [vmem:[#allocation5 + $0x178] sm:$0xff]  ;;  %614 = vmatprep.subr.mxu1 %v130_v3  ;;  %581 = vmatprep.subr.mxu0 %v97_v2  ;;  %v113_v9 = vld [vmem:[#allocation5 + $0x170] sm:$0xff]  ;;  %v128_v10 = vld [vmem:[#allocation5 + $0x1e8] sm:$0xff] }
  0x29   :  { %615 = vmatpush3.msra.mxu1 %v114_v5  ;;  %582 = vmatpush3.msra.mxu0 %v81_v4  ;;  %v95_v11 = vld [vmem:[#allocation5 + $0xe0] sm:$0xff]  ;;  %v112_v12 = vld [vmem:[#allocation5 + $0x168] sm:$0xff]  ;;  %v94_v15 = vld [vmem:[#allocation5 + $0xd8] sm:$0xff] }
  0x2a   :  { %616 = vmatprep.subr.mxu1 %v129_v7  ;;  %583 = vmatprep.subr.mxu0 %v96_v6  ;;  %v79_v13 = vld [vmem:[#allocation5 + $0x60] sm:$0xff]  ;;  %v78_v17 = vld [vmem:[#allocation5 + $0x58] sm:$0xff]  ;;  %v93_v19 = vld [vmem:[#allocation5 + $0xd0] sm:$0xff] }
  0x2b   :  { %617 = vmatpush3.msra.mxu1 %v113_v9  ;;  %v127_v14 = vld [vmem:[#allocation5 + $0x1e0] sm:$0xff]  ;;  %584 = vmatpush3.msra.mxu0 %v80_v8  ;;  %v126_v18 = vld [vmem:[#allocation5 + $0x1d8] sm:$0xff]  ;;  %v77_v21 = vld [vmem:[#allocation5 + $0x50] sm:$0xff] }
  0x2c   :  { %618 = vmatprep.subr.mxu1 %v128_v10  ;;  %v111_v16 = vld [vmem:[#allocation5 + $0x160] sm:$0xff]  ;;  %585 = vmatprep.subr.mxu0 %v95_v11  ;;  %v110_v20 = vld [vmem:[#allocation5 + $0x158] sm:$0xff]  ;;  %v125_v22 = vld [vmem:[#allocation5 + $0x1d0] sm:$0xff] }
  0x2d   :  { %619 = vmatpush3.msra.mxu1 %v112_v12  ;;  %586 = vmatpush3.msra.mxu0 %v79_v13  ;;  %v92_v23 = vld [vmem:[#allocation5 + $0xc8] sm:$0xff]  ;;  %v109_v24 = vld [vmem:[#allocation5 + $0x150] sm:$0xff]  ;;  %v91_v27 = vld [vmem:[#allocation5 + $0xc0] sm:$0xff] }
  0x2e   :  { %620 = vmatprep.subr.mxu1 %v127_v14  ;;  %587 = vmatprep.subr.mxu0 %v94_v15  ;;  %v76_v25 = vld [vmem:[#allocation5 + $0x48] sm:$0xff]  ;;  %v75_v29 = vld [vmem:[#allocation5 + $0x40] sm:$0xff]  ;;  %v90_v31 = vld [vmem:[#allocation5 + $0xb8] sm:$0xff]  ;;  %v849_v14 = vmov 0.0  }
  0x2f   :  { %621 = vmatpush3.msra.mxu1 %v111_v16  ;;  %588 = vmatpush3.msra.mxu0 %v78_v17  ;;  %v124_v26 = vld [vmem:[#allocation5 + $0x1c8] sm:$0xff]  ;;  %v123_v30 = vld [vmem:[#allocation5 + $0x1c0] sm:$0xff]  ;;  %v74_v33 = vld [vmem:[#allocation5 + $0x38] sm:$0xff] }
  0x30   :  { %622 = vmatprep.subr.mxu1 %v126_v18  ;;  %589 = vmatprep.subr.mxu0 %v93_v19  ;;  %v108_v28 = vld [vmem:[#allocation5 + $0x148] sm:$0xff]  ;;  %v107_v32 = vld [vmem:[#allocation5 + $0x140] sm:$0xff]  ;;  %v122_v34 = vld [vmem:[#allocation5 + $0x1b8] sm:$0xff] }
  0x31   :  { %623 = vmatpush3.msra.mxu1 %v110_v20  ;;  %590 = vmatpush3.msra.mxu0 %v77_v21  ;;  %v89_v35 = vld [vmem:[#allocation5 + $0xb0] sm:$0xff]  ;;  %v106_v36 = vld [vmem:[#allocation5 + $0x138] sm:$0xff]  ;;  %v88_v39 = vld [vmem:[#allocation5 + $0xa8] sm:$0xff] }
  0x32   :  { %624 = vmatprep.subr.mxu1 %v125_v22  ;;  %591 = vmatprep.subr.mxu0 %v92_v23  ;;  %v73_v37 = vld [vmem:[#allocation5 + $0x30] sm:$0xff]  ;;  %v72_v41 = vld [vmem:[#allocation5 + $0x28] sm:$0xff]  ;;  %v87_v43 = vld [vmem:[#allocation5 + $0xa0] sm:$0xff] }
  0x33   :  { %625 = vmatpush3.msra.mxu1 %v109_v24  ;;  %592 = vmatpush3.msra.mxu0 %v76_v25  ;;  %v121_v38 = vld [vmem:[#allocation5 + $0x1b0] sm:$0xff]  ;;  %v120_v42 = vld [vmem:[#allocation5 + $0x1a8] sm:$0xff]  ;;  %v71_v45 = vld [vmem:[#allocation5 + $0x20] sm:$0xff] }
  0x34   :  { %626 = vmatprep.subr.mxu1 %v124_v26  ;;  %593 = vmatprep.subr.mxu0 %v91_v27  ;;  %v105_v40 = vld [vmem:[#allocation5 + $0x130] sm:$0xff]  ;;  %v104_v44 = vld [vmem:[#allocation5 + $0x128] sm:$0xff]  ;;  %v119_v46 = vld [vmem:[#allocation5 + $0x1a0] sm:$0xff] }
  0x35   :  { %627 = vmatpush3.msra.mxu1 %v108_v28  ;;  %594 = vmatpush3.msra.mxu0 %v75_v29  ;;  %v86_v47 = vld [vmem:[#allocation5 + $0x98] sm:$0xff]  ;;  %v103_v48 = vld [vmem:[#allocation5 + $0x120] sm:$0xff]  ;;  %v85_v51 = vld [vmem:[#allocation5 + $0x90] sm:$0xff] }
  0x36   :  { %628 = vmatprep.subr.mxu1 %v123_v30  ;;  %595 = vmatprep.subr.mxu0 %v90_v31  ;;  %v70_v49 = vld [vmem:[#allocation5 + $0x18] sm:$0xff]  ;;  %v69_v53 = vld [vmem:[#allocation5 + $0x10] sm:$0xff]  ;;  %v84_v55 = vld [vmem:[#allocation5 + $0x88] sm:$0xff] }
  0x37   :  { %629 = vmatpush3.msra.mxu1 %v107_v32  ;;  %596 = vmatpush3.msra.mxu0 %v74_v33  ;;  %v118_v50 = vld [vmem:[#allocation5 + $0x198] sm:$0xff]  ;;  %v117_v54 = vld [vmem:[#allocation5 + $0x190] sm:$0xff]  ;;  %v68_v57 = vld [vmem:[#allocation5 + $0x8] sm:$0xff] }
  0x38   :  { %630 = vmatprep.subr.mxu1 %v122_v34  ;;  %597 = vmatprep.subr.mxu0 %v89_v35  ;;  %v102_v52 = vld [vmem:[#allocation5 + $0x118] sm:$0xff]  ;;  %v101_v56 = vld [vmem:[#allocation5 + $0x110] sm:$0xff]  ;;  %v116_v58 = vld [vmem:[#allocation5 + $0x188] sm:$0xff] }
  0x39   :  { %631 = vmatpush3.msra.mxu1 %v106_v36  ;;  %598 = vmatpush3.msra.mxu0 %v73_v37  ;;  %v83_v59 = vld [vmem:[#allocation5 + $0x80] sm:$0xff]  ;;  %v61_v60 = vld [vmem:[#allocation2 + $0x8] sm:$0xff]  ;;  %v100_v62 = vld [vmem:[#allocation5 + $0x108] sm:$0xff] }
  0x3a   :  { %632 = vmatprep.subr.mxu1 %v121_v38  ;;  %599 = vmatprep.subr.mxu0 %v88_v39  ;;  %v67_v61 = vld [vmem:[#allocation5] sm:$0xff]  ;;  %v60_v63 = vld [vmem:[#allocation2] sm:$0xff]  ;;  %v162_v1 = vld [vmem:[#allocation5 + $0x2f8] sm:$0xff] }
  0x3b   :  { %633 = vmatpush3.msra.mxu1 %v105_v40  ;;  %600 = vmatpush3.msra.mxu0 %v72_v41  ;;  %v115_v0 = vld [vmem:[#allocation5 + $0x180] sm:$0xff]  ;;  %v146_v4 = vld [vmem:[#allocation5 + $0x278] sm:$0xff]  ;;  %v161_v6 = vld [vmem:[#allocation5 + $0x2f0] sm:$0xff] }
  0x3c   :  { %634 = vmatprep.subr.mxu1 %v120_v42  ;;  %601 = vmatprep.subr.mxu0 %v87_v43  ;;  %v99_v2 = vld [vmem:[#allocation5 + $0x100] sm:$0xff]  ;;  %v62_v5 = vld [vmem:[#allocation2 + $0x10] sm:$0xff]  ;;  %v145_v7 = vld [vmem:[#allocation5 + $0x270] sm:$0xff] }
  0x3d   :  { %635 = vmatpush3.msra.mxu1 %v104_v44  ;;  %602 = vmatpush3.msra.mxu0 %v71_v45  ;;  %v63_v3 = vld [vmem:[#allocation2 + $0x18] sm:$0xff]  ;;  %v65_v8 = vld [vmem:[#allocation2 + $0x28] sm:$0xff]  ;;  %v160_v9 = vld [vmem:[#allocation5 + $0x2e8] sm:$0xff] }
  0x3e   :  { %636 = vmatprep.subr.mxu1 %v119_v46  ;;  %603 = vmatprep.subr.mxu0 %v86_v47  ;;  %v144_v10 = vld [vmem:[#allocation5 + $0x268] sm:$0xff]  ;;  %v159_v12 = vld [vmem:[#allocation5 + $0x2e0] sm:$0xff]  ;;  %v158_v16 = vld [vmem:[#allocation5 + $0x2d8] sm:$0xff] }
  0x3f   :  { %637 = vmatpush3.msra.mxu1 %v103_v48  ;;  %604 = vmatpush3.msra.mxu0 %v70_v49  ;;  %v164_v11 = vld [vmem:[#allocation5 + $0x308] sm:$0xff]  ;;  %v143_v13 = vld [vmem:[#allocation5 + $0x260] sm:$0xff]  ;;  %v142_v17 = vld [vmem:[#allocation5 + $0x258] sm:$0xff] }
  0x40   :  { %638 = vmatprep.subr.mxu1 %v118_v50  ;;  %605 = vmatprep.subr.mxu0 %v85_v51  ;;  %v163_v15 = vld [vmem:[#allocation5 + $0x300] sm:$0xff]  ;;  %v66_v18 = vld [vmem:[#allocation2 + $0x30] sm:$0xff]  ;;  %v157_v19 = vld [vmem:[#allocation5 + $0x2d0] sm:$0xff] }
  0x41   :  { %639 = vmatpush3.msra.mxu1 %v102_v52  ;;  %606 = vmatpush3.msra.mxu0 %v69_v53  ;;  %v141_v20 = vld [vmem:[#allocation5 + $0x250] sm:$0xff]  ;;  %v156_v21 = vld [vmem:[#allocation5 + $0x2c8] sm:$0xff]  ;;  %v155_v23 = vld [vmem:[#allocation5 + $0x2c0] sm:$0xff] }
  0x42   :  { %640 = vmatprep.subr.mxu1 %v117_v54  ;;  %607 = vmatprep.subr.mxu0 %v84_v55  ;;  %v140_v22 = vld [vmem:[#allocation5 + $0x248] sm:$0xff]  ;;  %v139_v24 = vld [vmem:[#allocation5 + $0x240] sm:$0xff]  ;;  %v154_v25 = vld [vmem:[#allocation5 + $0x2b8] sm:$0xff] }
  0x43   :  { %641 = vmatpush3.msra.mxu1 %v101_v56  ;;  %608 = vmatpush3.msra.mxu0 %v68_v57  ;;  %v138_v26 = vld [vmem:[#allocation5 + $0x238] sm:$0xff]  ;;  %v153_v27 = vld [vmem:[#allocation5 + $0x2b0] sm:$0xff]  ;;  %v152_v29 = vld [vmem:[#allocation5 + $0x2a8] sm:$0xff] }
  0x44   :  { %642 = vmatprep.subr.mxu1 %v116_v58  ;;  %609 = vmatprep.subr.mxu0 %v83_v59  ;;  %v137_v28 = vld [vmem:[#allocation5 + $0x230] sm:$0xff]  ;;  %v136_v30 = vld [vmem:[#allocation5 + $0x228] sm:$0xff]  ;;  %v151_v31 = vld [vmem:[#allocation5 + $0x2a0] sm:$0xff] }
  0x45   :  { %240 = vmatprep.mubr.f32.mxu0 %v61_v60  ;;  %610 = vmatpush3.msra.mxu0 %v67_v61  ;;  %v135_v32 = vld [vmem:[#allocation5 + $0x220] sm:$0xff]  ;;  %v150_v33 = vld [vmem:[#allocation5 + $0x298] sm:$0xff]  ;;  %v149_v35 = vld [vmem:[#allocation5 + $0x290] sm:$0xff] }
  0x46   :  { %643 = vmatpush3.msra.mxu1 %v100_v62  ;;  %241 = vmatmul.mubr.f32.vlgmr.msra.gmra.mxu0 %v60_v63  ;;  %v134_v34 = vld [vmem:[#allocation5 + $0x218] sm:$0xff]  ;;  %v133_v36 = vld [vmem:[#allocation5 + $0x210] sm:$0xff]  ;;  %v148_v37 = vld [vmem:[#allocation5 + $0x288] sm:$0xff] }
  0x47   :  { %644 = vmatprep.subr.mxu1 %v115_v0  ;;  %649 = vmatprep.subr.mxu0 %v162_v1  ;;  %v132_v38 = vld [vmem:[#allocation5 + $0x208] sm:$0xff]  ;;  %v147_v39 = vld [vmem:[#allocation5 + $0x280] sm:$0xff]  ;;  %v470_v44 = vld [vmem:[#allocation7 + $0x68] sm:$0xff] }
  0x48   :  { %645 = vmatpush3.msra.mxu1 %v99_v2  ;;  %310 = vmatprep.mubr.f32.mxu1 %v63_v3  ;;  %v131_v40 = vld [vmem:[#allocation5 + $0x200] sm:$0xff]  ;;  %v64_v41 = vld [vmem:[#allocation2 + $0x20] sm:$0xff]  ;;  %v469_v45 = vld [vmem:[#allocation7 + $0x60] sm:$0xff] }
  0x49   :  { %650 = vmatpush3.msra.mxu0 %v146_v4  ;;  %311 = vmatmul.mubr.f32.vlgmr.msra.gmra.mxu1 %v62_v5  ;;  %v472_v42 = vld [vmem:[#allocation7 + $0x78] sm:$0xff]  ;;  %v471_v43 = vld [vmem:[#allocation7 + $0x70] sm:$0xff]  ;;  %v466_v48 = vld [vmem:[#allocation7 + $0x48] sm:$0xff] }
  0x4a   :  { %651 = vmatprep.subr.mxu0 %v161_v6  ;;  %380 = vmatprep.mubr.f32.mxu0 %v65_v8  ;;  %v468_v46 = vld [vmem:[#allocation7 + $0x58] sm:$0xff]  ;;  %v467_v47 = vld [vmem:[#allocation7 + $0x50] sm:$0xff]  ;;  %v465_v49 = vld [vmem:[#allocation7 + $0x40] sm:$0xff] }
  0x4b   :  { %652 = vmatpush3.msra.mxu0 %v145_v7  ;;  %704 = vmatprep.subr.mxu1 %v849_v14  ;;  %v464_v50 = vld [vmem:[#allocation7 + $0x38] sm:$0xff]  ;;  %v463_v51 = vld [vmem:[#allocation7 + $0x30] sm:$0xff]  ;;  %v462_v52 = vld [vmem:[#allocation7 + $0x28] sm:$0xff] }
  0x4c   :  { %653 = vmatprep.subr.mxu0 %v160_v9  ;;  %705 = vmatpush3.msra.mxu1 %v164_v11  ;;  %v461_v53 = vld [vmem:[#allocation7 + $0x20] sm:$0xff]  ;;  %v460_v54 = vld [vmem:[#allocation7 + $0x18] sm:$0xff]  ;;  %v459_v55 = vld [vmem:[#allocation7 + $0x10] sm:$0xff] }
  0x4d   :  { %654 = vmatpush3.msra.mxu0 %v144_v10  ;;  %706 = vmatprep.subr.mxu1 %v849_v14  ;;  %v458_v56 = vld [vmem:[#allocation7 + $0x8] sm:$0xff]  ;;  %v457_v57 = vld [vmem:[#allocation7] sm:$0xff]  ;;  %v576_v1 = vld [vmem:[%s922_s2] ss:$0 sm:$0xff]  ;;  %s851_s2 = smov [#allocation8]  }
  0x4e   :  { %655 = vmatprep.subr.mxu0 %v159_v12  ;;  %707 = vmatpush3.msra.mxu1 %v163_v15  ;;  %v578_v11 = vld [vmem:[%s924_s4] ss:$0 sm:$0xff]  ;;  %s566_s11 = sshll.u32 %s851_s2, 4  ;;  %s567_s11 = int_to_ptr.vmem [resolvable:$true] %s566_s11 }
  0x4f   :  { %656 = vmatpush3.msra.mxu0 %v143_v13  ;;  %708 = vmatprep.mubr.msk.f32.mxu1 %vm850_vm1, %v849_v14  ;;  %s818_s12 = scalar_lea.vmem %s567_s11, 128  ;;  %p823_p2 = scmp.lt.s32.totalorder %s567_s11, %s567_s11 }
  0x50   :  { %657 = vmatprep.subr.mxu0 %v158_v16  ;;  %709 = vmatmul.mubr.msk.f32.vlgmr.msra.gmra.mxu1 %vm172_vm0, %v66_v18  ;;  %p819_p1 = scmp.ne.s32.totalorder %s567_s11, %s818_s12  ;;  %p824_p3 = scmp.lt.s32.totalorder %s818_s12, %s818_s12 }
  0x51   :  { %658 = vmatpush3.msra.mxu0 %v142_v17  ;;  %711 = vmatprep.subr.mxu1 %v849_v14 }
  0x52   :  { %659 = vmatprep.subr.mxu0 %v157_v19  ;;  %743 = vmatprep.mubr.msk.f32.mxu1 %vm850_vm1, %v849_v14  ;;  %p825_p4 = por %p824_p3, %p823_p2 }
  0x53   :  { %660 = vmatpush3.msra.mxu0 %v141_v20  ;;  %712 = vmatpush3.msra.mxu1 %v472_v42 }
  0x54   :  { %661 = vmatprep.subr.mxu0 %v156_v21  ;;  %713 = vmatprep.subr.mxu1 %v849_v14  ;;  %p826_p5 = pnand %p825_p4, %p819_p1 }
  0x55   :  { %662 = vmatpush3.msra.mxu0 %v140_v22  ;;  %714 = vmatpush3.msra.mxu1 %v471_v43 }
  0x56   :  { %663 = vmatprep.subr.mxu0 %v155_v23  ;;  %715 = vmatprep.subr.mxu1 %v849_v14 }
  0x57   :  { %664 = vmatpush3.msra.mxu0 %v139_v24  ;;  %716 = vmatpush3.msra.mxu1 %v470_v44 }
  0x58   :  { %665 = vmatprep.subr.mxu0 %v154_v25  ;;  %717 = vmatprep.subr.mxu1 %v849_v14 }
  0x59   :  { %666 = vmatpush3.msra.mxu0 %v138_v26  ;;  %718 = vmatpush3.msra.mxu1 %v469_v45 }
  0x5a   :  { %667 = vmatprep.subr.mxu0 %v153_v27  ;;  %719 = vmatprep.subr.mxu1 %v849_v14 }
  0x5b   :  { %668 = vmatpush3.msra.mxu0 %v137_v28  ;;  %720 = vmatpush3.msra.mxu1 %v468_v46 }
  0x5c   :  { %669 = vmatprep.subr.mxu0 %v152_v29  ;;  %721 = vmatprep.subr.mxu1 %v849_v14 }
  0x5d   :  { %670 = vmatpush3.msra.mxu0 %v136_v30  ;;  %722 = vmatpush3.msra.mxu1 %v467_v47 }
  0x5e   :  { %671 = vmatprep.subr.mxu0 %v151_v31  ;;  %723 = vmatprep.subr.mxu1 %v849_v14 }
  0x5f   :  { %672 = vmatpush3.msra.mxu0 %v135_v32  ;;  %724 = vmatpush3.msra.mxu1 %v466_v48 }
  0x60   :  { %673 = vmatprep.subr.mxu0 %v150_v33  ;;  %725 = vmatprep.subr.mxu1 %v849_v14 }
  0x61   :  { %674 = vmatpush3.msra.mxu0 %v134_v34  ;;  %726 = vmatpush3.msra.mxu1 %v465_v49 }
  0x62   :  { %675 = vmatprep.subr.mxu0 %v149_v35  ;;  %727 = vmatprep.subr.mxu1 %v849_v14 }
  0x63   :  { %676 = vmatpush3.msra.mxu0 %v133_v36  ;;  %728 = vmatpush3.msra.mxu1 %v464_v50 }
  0x64   :  { %677 = vmatprep.subr.mxu0 %v148_v37  ;;  %729 = vmatprep.subr.mxu1 %v849_v14 }
  0x65   :  { %678 = vmatpush3.msra.mxu0 %v132_v38  ;;  %730 = vmatpush3.msra.mxu1 %v463_v51 }
  0x66   :  { %679 = vmatprep.subr.mxu0 %v147_v39  ;;  %731 = vmatprep.subr.mxu1 %v849_v14 }
  0x67   :  { %680 = vmatpush3.msra.mxu0 %v131_v40  ;;  %732 = vmatpush3.msra.mxu1 %v462_v52 }
  0x68   :  { %381 = vmatmul.mubr.f32.vlgmr.msra.gmra.mxu0 %v64_v41  ;;  %733 = vmatprep.subr.mxu1 %v849_v14 }
  0x69   :  { %734 = vmatpush3.msra.mxu1 %v461_v53 }
  0x6a   :  { %735 = vmatprep.subr.mxu1 %v849_v14 }
  0x6b   :  { %736 = vmatpush3.msra.mxu1 %v460_v54 }
  0x6c   :  { %737 = vmatprep.subr.mxu1 %v849_v14 }
  0x6d   :  { %738 = vmatpush3.msra.mxu1 %v459_v55 }
  0x6e   :  { %739 = vmatprep.subr.mxu1 %v849_v14 }
  0x6f   :  { %740 = vmatpush3.msra.mxu1 %v458_v56 }
  0x70   :  { %741 = vmatprep.subr.mxu1 %v849_v14 }
  0x71   :  { %742 = vmatpush3.msra.mxu1 %v457_v57 }
 0x106   :  { %v611_v62 = vpop.f32.mrf.mxu0 }
 0x108   :  { %v612_v63 = vpop.f32.mrf.mxu0 }
 0x109   :  { %v646_v58 = vpop.f32.mrf.mxu1  ;;  %v613_v0 = vadd.f32 %v612_v63, %v611_v62 }
 0x10b   :  { %v647_v59 = vpop.f32.mrf.mxu1  ;;  %v243_v2 = vadd.f32 %v613_v0, %v576_v1 }
 0x10c   :  { %v648_v3 = vadd.f32 %v647_v59, %v646_v58 }
 0x10e   :  { %v313_v6 = vadd.f32 %v648_v3, %v243_v2 }
 0x110   :  { %v452_v60 = vpop.f32.mrf.mxu1 }
 0x112   :  { %v710_v61 = vpop.f32.mrf.mxu1 }
 0x128   :  { %v681_v4 = vpop.f32.mrf.mxu0 }
 0x12a   :  { %v682_v5 = vpop.f32.mrf.mxu0 }
 0x12b   :  { %v683_v7 = vadd.f32 %v682_v5, %v681_v4 }
 0x12d   :  { %v383_v8 = vadd.f32 %v683_v7, %v313_v6 }
 0x12f   :  { %v453_v9 = vadd.f32 %v452_v60, %v383_v8 }
 0x131   :  { %v456_v10 = vmax.f32 %v453_v9, 0.0 }
 0x133   :  { %744 = vmatmul.mubr.f32.vlgmr.msra.gmra.mxu1 %v456_v10 }
 0x1f3   :  { %v546_v12 = vpop.f32.mrf.mxu1 }
 0x1f4   :  { %v547_v13 = vadd.f32 %v578_v11, %v546_v12 }
 0x1f5   :  { %v745_v14 = vpop.f32.mrf.mxu1 }
 0x1f6   :  { %550 = vmax.xlane.f32.xlu0 %v547_v13 }
 0x27f   :  { %v551_v15 = vpop.xlane.xlu0 %550 }
 0x280   :  { %v552_v16 = vsub.f32 %v547_v13, %v551_v15 }
 0x282   :  { %v553_v17 = vmul.f32 1.442695, %v552_v16 }
 0x284   :  { %754 = vpow2.f32 %v553_v17 }
 0x291   :  { %v755_v18 = vpop.eup %754 }
 0x292   :  { %555 = vadd.xlane.f32.xlu0 %v755_v18 }
 0x31b   :  { %v556_v19 = vpop.xlane.xlu0 %555 }
 0x31c   :  { %756 = vrcp.f32 %v556_v19 }
 0x329   :  { %v757_v20 = vpop.eup %756 }
 0x32a   :  { %v558_v21 = vmul.f32 %v757_v20, %v755_v18 }
 0x32c   :  { %559 = vst [vmem:[#allocation8] sm:$0xff] %v558_v21 }
 0x32d   :  { %829 = shalt.err (!%p826_p5)
}
 0x32e   :  { %569 = dma.vmem_to_hbm [thread:$0]  %s567_s11, 128, %s925_s5, [#allocation4]  }
 0x32f   :  { %842 = dma.done.wait [#allocation4], 128  }
 0x330   :  { %843 = vsyncadd [#allocation4], 4294967168 }
 0x331   :  { %573 = vsyncpa [#allocation3], 1 }
 0x332   :  { %574 = vsyncpa [#allocation6], 1 }
 0x333   :  { %575 = vsyncpa [#allocation4], 1 }

</bundles_post_ra>
